<compile_context>
chip_gen: v6e
topology: v6e:2x2x1
jax: 0.10.0
libtpu: 0.0.40
codegen_flags: <defaults>
</compile_context>

<pallas_src>
import functools

import jax
import jax.numpy as jnp
from jax.experimental import pallas as pl
from jax.experimental.pallas import tpu as pltpu

BN_EPS = 1e-5
LANE = 128
SUBLANE = 8


def _round_up(x, m):
    return (x + m - 1) // m * m


def _ceil_div(a, b):
    return -(-a // b)


def _vmem_block_bytes(shape, itemsize):
    """VMEM bytes of one buffer of `shape`, including (sublane, lane) layout padding."""
    s = list(shape)
    s[-1] = _round_up(s[-1], LANE)
    if len(s) >= 2:
        packing = max(1, 4 // itemsize)          # sub-32-bit dtypes pack along sublanes
        s[-2] = _round_up(s[-2], SUBLANE * packing)
    n = itemsize
    for d in s:
        n *= d
    return n


def _vmem_budget_bytes():
    """Target footprint for the pipelined buffers, per TPU generation."""
    try:
        phys = int(pltpu.get_tpu_info().vmem_capacity_bytes)
    except Exception:                            # unknown chip / emulator: be conservative
        phys = 64 << 20                          # v7x-sized physical VMEM
    # ~60% of physical, capped at 48 MiB: ~38 MiB on v7x (64 MiB), 48 MiB on
    # v5e/v6e (128 MiB).  Leaves headroom for compiler-internal scratch.
    return min(int(phys * 0.6), 48 << 20)


def _choose_batch_tile(batch, max_tile=256, align=SUBLANE):
    """Near-equal 8-multiple chunks that minimize batch padding; prefer >=2 grid
    blocks on the parallel axis so v7x's second TensorCore gets work."""
    n = max(1, _ceil_div(batch, max_tile))
    tile = _round_up(_ceil_div(batch, n), align)
    if _ceil_div(batch, tile) == 1 and tile > align:
        tile = _round_up(_ceil_div(tile, 2), align)
    return tile


def _fasttext_kernel(emb_ref, w_ref, b_ref, out_ref, acc_ref, *, inv_seq_len):
    # emb_ref: [St, Bt, E] bf16  (seq tile, batch tile, embedding dim)
    # w_ref:   [E, Opad]  bf16   BN-folded fc weight (constant block index)
    # b_ref:   [1, Opad]  f32    BN-folded fc bias   (constant block index)
    # out_ref: [Bt, Opad] f32    written only on the last seq step
    # acc_ref: [Bt, E]    f32    accumulator scratch, persists across the seq axis
    s = pl.program_id(1)

    @pl.when(s == 0)
    def _init():
        acc_ref[...] = jnp.zeros_like(acc_ref)

    x = emb_ref[...].astype(jnp.float32)              # bf16 -> f32 upcast
    acc_ref[...] += jnp.sum(x, axis=0)                # leading-axis reduce: VPU adds

    @pl.when(s == pl.num_programs(1) - 1)
    def _finalize():
        pooled = acc_ref[...] * inv_seq_len           # exact mean over true seq length
        y = jnp.dot(pooled.astype(jnp.bfloat16), w_ref[...],
                    preferred_element_type=jnp.float32) + b_ref[...]
        out_ref[...] = y.astype(out_ref.dtype)


def fasttext_forward(text, params, *, batch_tile=None, seq_tile=None):
    """text: [seq_len, batch] int32 token ids (seq-major, torchtext convention)."""
    emb_table = params["embedding"]                   # [V, E]
    fc_w = params["fc_w"]                             # [E, O]
    fc_b = params["fc_b"]                             # [O]
    E, O = fc_w.shape
    S, B = text.shape

    # ---- Fold eval-mode BatchNorm1d + bias into the linear layer (one-off, wrapper side).
    # PyTorch skips BN entirely when the pooled batch is 1 (static branch).
    if B == 1:
        w_f, b_f = fc_w, fc_b
    else:
        scale = params["bn_gamma"] * jax.lax.rsqrt(params["bn_var"] + BN_EPS)
        w_f = fc_w * scale[None, :]
        b_f = (fc_b - params["bn_mean"]) * scale + params["bn_beta"]
    # TODO(synk): Dropout is identity here (eval mode); no stochastic masking.

    # ---- Lane-dense output: pad output_dim up to a multiple of 128 lanes.
    O_pad = _round_up(O, LANE)
    w_f = jnp.pad(w_f, ((0, 0), (0, O_pad - O))).astype(jnp.bfloat16)
    b_f = jnp.pad(b_f, (0, O_pad - O)).reshape(1, O_pad).astype(jnp.float32)

    # ---- Embedding gather (XLA glue), streamed in bf16: halves the HBM bytes of
    # the [S, B, E] intermediate in this bandwidth-bound kernel.
    # TODO(synk): when V*E*2 fits the VMEM budget the gather could move in-kernel
    # (resident bf16 table + scalar-prefetched ids) to kill the HBM round trip;
    # kept in XLA here because vectorized in-kernel gather support is shape-fragile.
    embedded = jnp.take(emb_table.astype(jnp.bfloat16), text, axis=0)   # [S, B, E]

    # ---- VMEM-budget-aware tile selection (budget is per TPU generation).
    budget = _vmem_budget_bytes()
    if batch_tile is None:
        batch_tile = _choose_batch_tile(B)
    # Resident / per-batch-tile buffers.  The BlockSpec pipeline double-buffers
    # inputs & outputs even for constant block indices, so count them 2x.
    # TODO(synk): pipeline_mode=pl.Buffered(1) on w/b would drop their second
    # buffer; omitted since top-level pallas_call support for it is version-dependent.
    fixed_bytes = (2 * _vmem_block_bytes((E, O_pad), 2)                 # w (bf16)
                   + 2 * _vmem_block_bytes((1, O_pad), 4)               # b (f32)
                   + _vmem_block_bytes((batch_tile, E), 4)              # acc scratch
                   + 2 * _vmem_block_bytes((batch_tile, O_pad), 4))     # out (f32)
    per_seq_bytes = 2 * _vmem_block_bytes((1, batch_tile, E), 2)        # dbl-buffered emb
    if seq_tile is None:
        avail = max(budget - fixed_bytes - (2 << 20), per_seq_bytes)
        cap = max(1, min(avail // per_seq_bytes, 1024, S))
        seq_tile = _ceil_div(S, _ceil_div(S, cap))                      # near-equal chunks

    B_pad = _round_up(B, batch_tile)
    S_pad = _round_up(S, seq_tile)
    embedded = jnp.pad(embedded, ((0, S_pad - S), (0, B_pad - B), (0, 0)))  # zero pad

    est_bytes = fixed_bytes + seq_tile * per_seq_bytes
    vmem_limit = int(min(max(est_bytes + (4 << 20), 32 << 20), 100 << 20))

    grid = (B_pad // batch_tile, S_pad // seq_tile)
    kernel = functools.partial(_fasttext_kernel, inv_seq_len=1.0 / S)

    out = pl.pallas_call(
        kernel,
        out_shape=jax.ShapeDtypeStruct((B_pad, O_pad), jnp.float32),
        grid_spec=pltpu.PrefetchScalarGridSpec(
            num_scalar_prefetch=0,
            grid=grid,
            in_specs=[
                pl.BlockSpec((seq_tile, batch_tile, E), lambda i, j: (j, i, 0)),
                pl.BlockSpec((E, O_pad), lambda i, j: (0, 0)),
                pl.BlockSpec((1, O_pad), lambda i, j: (0, 0)),
            ],
            out_specs=pl.BlockSpec((batch_tile, O_pad), lambda i, j: (i, 0)),
            scratch_shapes=[pltpu.VMEM((batch_tile, E), jnp.float32)],
        ),
        compiler_params=pltpu.CompilerParams(
            dimension_semantics=("parallel", "arbitrary"),
            vmem_limit_bytes=vmem_limit),
    )(embedded, w_f, b_f)

    return out[:B, :O]


def init_params(key, vocab_size, embedding_dim, output_dim, pad_idx):
    k_emb, k_w, k_b, k_g, k_be, k_m, k_v = jax.random.split(key, 7)
    embedding = jax.random.normal(k_emb, (vocab_size, embedding_dim), jnp.float32)
    # padding_idx row is zeroed, matching nn.Embedding(padding_idx=pad_idx)
    embedding = embedding.at[pad_idx].set(0.0)

    bound = 1.0 / (embedding_dim ** 0.5)
    fc_w = jax.random.uniform(k_w, (embedding_dim, output_dim), jnp.float32,
                              -bound, bound)
    fc_b = jax.random.uniform(k_b, (output_dim,), jnp.float32, -bound, bound)

    bn_gamma = 1.0 + 0.1 * jax.random.normal(k_g, (output_dim,), jnp.float32)
    bn_beta = 0.1 * jax.random.normal(k_be, (output_dim,), jnp.float32)
    bn_mean = 0.1 * jax.random.normal(k_m, (output_dim,), jnp.float32)
    bn_var = jnp.abs(1.0 + 0.1 * jax.random.normal(k_v, (output_dim,), jnp.float32))

    return dict(embedding=embedding, fc_w=fc_w, fc_b=fc_b,
                bn_gamma=bn_gamma, bn_beta=bn_beta,
                bn_mean=bn_mean, bn_var=bn_var)


def reference_forward(text, params):
    """Pure-JAX f32 reference for numerical validation (eval-mode PyTorch semantics)."""
    embedded = jnp.take(params["embedding"], text, axis=0)      # [S, B, E]
    embedded = jnp.transpose(embedded, (1, 0, 2))               # [B, S, E]
    pooled = jnp.mean(embedded, axis=1)                         # [B, E]
    fc = pooled @ params["fc_w"] + params["fc_b"]               # [B, O]
    if pooled.shape[0] == 1:
        return fc
    inv_std = jax.lax.rsqrt(params["bn_var"] + BN_EPS)
    return (fc - params["bn_mean"]) * inv_std * params["bn_gamma"] + params["bn_beta"]


if __name__ == "__main__":
    vocab_size, embedding_dim, output_dim, pad_idx = 50, 32, 16, 0
    seq_len, batch = 8, 4

    key = jax.random.PRNGKey(0)
    k_params, k_text = jax.random.split(key)
    params = init_params(k_params, vocab_size, embedding_dim, output_dim, pad_idx)

    # text: [seq_len, batch] int token ids (seq-major, torchtext convention)
    text = jax.random.randint(k_text, (seq_len, batch), 0, vocab_size, jnp.int32)

    out = jax.block_until_ready(fasttext_forward(text, params))
    ref = reference_forward(text, params)

    assert out.shape == (batch, output_dim)
    # bf16 embedding streaming + bf16 matmul feed: tolerance loosened vs the pure
    # f32 path (accumulation stays in f32 scratch, so error remains small).
    max_err = float(jnp.max(jnp.abs(out - ref)))
    assert jnp.allclose(out, ref, atol=2e-2, rtol=2e-2), \
        f"mismatch vs reference (max abs err {max_err})"

    print("KERNEL_OK")
</pallas_src>

<mosaic_0001>
module attributes {stable_mosaic.version = 11 : i64} {
  func.func @_fasttext_kernel(%arg0: i32, %arg1: i32, %arg2: memref<8x8x32xbf16, #tpu.memory_space<vmem>>, %arg3: memref<32x128xbf16, #tpu.memory_space<vmem>>, %arg4: memref<1x128xf32, #tpu.memory_space<vmem>>, %arg5: memref<8x128xf32, #tpu.memory_space<vmem>>, %arg6: memref<8x32xf32, #tpu.memory_space<vmem>>) attributes {dimension_semantics = [#tpu.dimension_semantics<parallel>, #tpu.dimension_semantics<arbitrary>], iteration_bounds = array<i64: 1, 1>, scalar_prefetch = 0 : i64, scratch_operands = 1 : i64, tpu.core_type = #tpu.core_type<tc>, window_params = [{transform_indices = @transform_0, window_bounds = array<i64: 8, 8, 32>}, {pipeline_mode = #tpu.pipeline_mode<synchronous>, transform_indices = @transform_1, window_bounds = array<i64: 32, 128>}, {pipeline_mode = #tpu.pipeline_mode<synchronous>, transform_indices = @transform_2, window_bounds = array<i64: 1, 128>}, {transform_indices = @transform_3, window_bounds = array<i64: 8, 128>}]} {
    %c0_i32 = arith.constant 0 : i32
    %0 = arith.cmpi eq, %arg1, %c0_i32 : i32
    %1 = arith.extui %0 : i1 to i32
    %c0_i32_0 = arith.constant 0 : i32
    %2 = arith.cmpi ne, %1, %c0_i32_0 : i32
    scf.if %2 {
      %cst_9 = arith.constant 0.000000e+00 : f32
      %12 = vector.broadcast %cst_9 : f32 to vector<8x32xf32>
      %c0_10 = arith.constant 0 : index
      %c0_11 = arith.constant 0 : index
      %13 = vector.load %arg6[%c0_10, %c0_11] : memref<8x32xf32, #tpu.memory_space<vmem>>, vector<8x32xf32>
      tpu.vector_store %arg6[%c0_10, %c0_11], %12 {strides = array<i32>} : memref<8x32xf32, #tpu.memory_space<vmem>>, vector<8x32xf32>,
    } else {
    }
    %c0 = arith.constant 0 : index
    %c0_1 = arith.constant 0 : index
    %c0_2 = arith.constant 0 : index
    %3 = vector.load %arg2[%c0, %c0_1, %c0_2] : memref<8x8x32xbf16, #tpu.memory_space<vmem>>, vector<8x8x32xbf16>
    %4 = arith.extf %3 : vector<8x8x32xbf16> to vector<8x8x32xf32>
    %c0_3 = arith.constant 0 : index
    %c0_4 = arith.constant 0 : index
    %5 = vector.load %arg6[%c0_3, %c0_4] : memref<8x32xf32, #tpu.memory_space<vmem>>, vector<8x32xf32>
    %cst = arith.constant dense<0.000000e+00> : vector<8x32xf32>
    %6 = vector.multi_reduction <add>, %4, %cst [0] : vector<8x8x32xf32> to vector<8x32xf32>
    %7 = arith.addf %5, %6 : vector<8x32xf32>
    %c0_5 = arith.constant 0 : index
    %c0_6 = arith.constant 0 : index
    %8 = vector.load %arg6[%c0_5, %c0_6] : memref<8x32xf32, #tpu.memory_space<vmem>>, vector<8x32xf32>
    tpu.vector_store %arg6[%c0_5, %c0_6], %7 {strides = array<i32>} : memref<8x32xf32, #tpu.memory_space<vmem>>, vector<8x32xf32>,
    %c0_i32_7 = arith.constant 0 : i32
    %9 = arith.cmpi eq, %arg1, %c0_i32_7 : i32
    %10 = arith.extui %9 : i1 to i32
    %c0_i32_8 = arith.constant 0 : i32
    %11 = arith.cmpi ne, %10, %c0_i32_8 : i32
    scf.if %11 {
      %c0_9 = arith.constant 0 : index
      %c0_10 = arith.constant 0 : index
      %12 = vector.load %arg6[%c0_9, %c0_10] : memref<8x32xf32, #tpu.memory_space<vmem>>, vector<8x32xf32>
      %cst_11 = arith.constant 1.250000e-01 : f32
      %13 = vector.broadcast %cst_11 : f32 to vector<8x32xf32>
      %14 = arith.mulf %12, %13 : vector<8x32xf32>
      %15 = arith.truncf %14 : vector<8x32xf32> to vector<8x32xbf16>
      %c0_12 = arith.constant 0 : index
      %c0_13 = arith.constant 0 : index
      %16 = vector.load %arg3[%c0_12, %c0_13] : memref<32x128xbf16, #tpu.memory_space<vmem>>, vector<32x128xbf16>
      %cst_14 = arith.constant dense<0.000000e+00> : vector<8x128xf32>
      %17 = tpu.matmul %15, %16, %cst_14 {dimension_numbers = #tpu.dot_dimension_numbers<[1], [0], [0], [1], [0, 0, 1, 1], [], []>} : vector<8x32xbf16>, vector<32x128xbf16>, vector<8x128xf32> -> vector<8x128xf32>
      %c0_15 = arith.constant 0 : index
      %c0_16 = arith.constant 0 : index
      %18 = vector.load %arg4[%c0_15, %c0_16] : memref<1x128xf32, #tpu.memory_space<vmem>>, vector<1x128xf32>
      %19 = vector.broadcast %18 : vector<1x128xf32> to vector<8x128xf32>
      %20 = arith.addf %17, %19 : vector<8x128xf32>
      %c0_17 = arith.constant 0 : index
      %c0_18 = arith.constant 0 : index
      %21 = vector.load %arg5[%c0_17, %c0_18] : memref<8x128xf32, #tpu.memory_space<vmem>>, vector<8x128xf32>
      tpu.vector_store %arg5[%c0_17, %c0_18], %20 {strides = array<i32>} : memref<8x128xf32, #tpu.memory_space<vmem>>, vector<8x128xf32>,
    } else {
    }
    return
  }
  func.func @transform_0(%arg0: i32, %arg1: i32) -> (i32, i32, i32) {
    %c0_i32 = arith.constant 0 : i32
    %c0_i32_0 = arith.constant 0 : i32
    return %arg1, %arg0, %c0_i32 : i32, i32, i32
  }
  func.func @transform_1(%arg0: i32, %arg1: i32) -> (i32, i32) {
    %c0_i32 = arith.constant 0 : i32
    %c0_i32_0 = arith.constant 0 : i32
    %c0_i32_1 = arith.constant 0 : i32
    return %c0_i32, %c0_i32_0 : i32, i32
  }
  func.func @transform_2(%arg0: i32, %arg1: i32) -> (i32, i32) {
    %c0_i32 = arith.constant 0 : i32
    %c0_i32_0 = arith.constant 0 : i32
    %c0_i32_1 = arith.constant 0 : i32
    return %c0_i32, %c0_i32_0 : i32, i32
  }
  func.func @transform_3(%arg0: i32, %arg1: i32) -> (i32, i32) {
    %c0_i32 = arith.constant 0 : i32
    %c0_i32_0 = arith.constant 0 : i32
    return %arg0, %c0_i32 : i32, i32
  }
}

</mosaic_0001>

<bundles_post_ra>
// kernel: tpu_custom_call.1
= control target key start
LH: loop header
LB: loop body
LE: loop exit
PB: predicated region body
PF: predicated region fallthrough
CT: control target
= control target key end

     0   :  { %8 = vsyncpa [#allocation4], 0  ;;  %s333_s0 = inlined_call_operand.hbm [shape: bf16[8,8,32], index: 0, kind: input, shape index: {}]   ;;  %s334_s1 = inlined_call_operand.hbm [shape: bf16[32,128], index: 1, kind: input, shape index: {}]   ;;  %s335_s2 = inlined_call_operand.vmem [shape: f32[1,128], index: 2, kind: input, shape index: {}]   ;;  %s336_s3 = inlined_call_operand.hbm [shape: f32[8,128], index: 3, kind: output, shape index: {}]  }
   0x1   :  { %9 = vsyncpa [#allocation7], 0 }
   0x2   :  { %10 = vsyncpa [#allocation5], 0  ;;  %s283_s12 = smov [#allocation3]  }
   0x3   :  { %s16_s13 = sshll.u32 %s283_s12, 4  ;;  %s17_s13 = int_to_ptr.vmem [resolvable:$true] %s16_s13 }
   0x4   :  { %s225_s14 = scalar_lea.vmem %s17_s13, 512  ;;  %p230_p1 = scmp.lt.s32.totalorder %s17_s13, %s17_s13 }
   0x5   :  { %p226_p0 = scmp.ne.s32.totalorder %s17_s13, %s225_s14  ;;  %p231_p2 = scmp.lt.s32.totalorder %s225_s14, %s225_s14 }
   0x7   :  { %p232_p3 = por %p231_p2, %p230_p1 }
   0x9   :  { %p233_p4 = pnand %p232_p3, %p226_p0 }
   0xb   :  { %236 = shalt.err (!%p233_p4)
}
   0xc   :  { %s284_s15 = smov 64   ;;  %s285_s16 = smov 4  }
   0xd   :  { %22 = dma.hbm_to_vmem [thread:$0]  %s333_s0, 512, %s17_s13, [#allocation4], %s284_s15, %s284_s15, %s285_s16  }
   0xe   :  { %s286_s19 = smov [#allocation6]  }
   0xf   :  { %s28_s20 = sshll.u32 %s286_s19, 4  ;;  %s29_s20 = int_to_ptr.vmem [resolvable:$true] %s28_s20 }
  0x10   :  { %s245_s21 = scalar_lea.vmem %s29_s20, 256  ;;  %p250_p6 = scmp.lt.s32.totalorder %s29_s20, %s29_s20 }
  0x11   :  { %p246_p5 = scmp.ne.s32.totalorder %s29_s20, %s245_s21  ;;  %p251_p7 = scmp.lt.s32.totalorder %s245_s21, %s245_s21 }
  0x13   :  { %p252_p8 = por %p251_p7, %p250_p6 }
  0x15   :  { %p253_p9 = pnand %p252_p8, %p246_p5 }
  0x17   :  { %256 = shalt.err (!%p253_p9)
}
  0x18   :  { %34 = dma.hbm_to_vmem [thread:$0]  %s334_s1, 256, %s29_s20, [#allocation7], %s284_s15, %s284_s15, %s285_s16  }
  0x19   :  { %277 = dma.done.wait [#allocation4], 512  }
  0x1a   :  { %278 = vsyncadd [#allocation4], 4294966784 }
  0x1b   :  { %279 = dma.done.wait [#allocation7], 256  }
  0x1c   :  { %280 = vsyncadd [#allocation7], 4294967040  ;;  %vm48_vm0 = vcmask 261120   ;;  %v287_v0 = vmov 0.0   ;;  %vm288_vm1 = vmmov 0   ;;  %v179_v1 = vld [vmem:[#allocation3] sm:$0xff]  }
  0x1d   :  { %49 = vst.msk [vmem:[#allocation2] sm:$0xff] %vm48_vm0, %v287_v0  ;;  %200 = vmatprep.subr.bf16.mxu0 %v287_v0  ;;  %204 = vmatprep.mubr.msk.bf16.mxu0 %vm288_vm1, %v287_v0  ;;  %v194_v2 = vld [vmem:[#allocation3 + $0x8] sm:$0xff]   ;;  %v195_v3 = vld [vmem:[#allocation3 + $0x10] sm:$0xff]   ;;  %v180_v4 = vunpack.c.l.bf16 %v179_v1  ;;  %v181_v5 = vunpack.c.h.bf16 %v179_v1  ;;  %v196_v13 = vld [vmem:[#allocation3 + $0x18] sm:$0xff]   ;;  %s289_s24 = smov [#allocation8]  }
  0x1e   :  { %v184_v6 = vunpack.c.l.bf16 %v194_v2  ;;  %v185_v7 = vunpack.c.h.bf16 %v194_v2  ;;  %v215_v8 = vld [vmem:[#allocation6 + $0x8] sm:$0xff]   ;;  %v188_v9 = vunpack.c.l.bf16 %v195_v3  ;;  %v216_v15 = vld [vmem:[#allocation6] sm:$0xff]   ;;  %v189_v16 = vunpack.c.h.bf16 %v195_v3  ;;  %v174_v35 = vld [vmem:[%s335_s2] ss:$0 sm:$0xff]  ;;  %s164_s25 = sshll.u32 %s289_s24, 4  ;;  %s165_s25 = int_to_ptr.vmem [resolvable:$true] %s164_s25 }
  0x1f   :  { %v68_v10 = vsel %vm48_vm0, %v180_v4, 0.0  ;;  %v69_v11 = vsel %vm48_vm0, %v181_v5, 0.0  ;;  %201 = vmatpush3.bf16.msra.mxu0 %v215_v8  ;;  %v192_v19 = vunpack.c.l.bf16 %v196_v13  ;;  %v193_v22 = vunpack.c.h.bf16 %v196_v13  ;;  %s257_s26 = scalar_lea.vmem %s165_s25, 128  ;;  %p262_p11 = scmp.lt.s32.totalorder %s165_s25, %s165_s25 }
  0x20   :  { %v71_v12 = vsel %vm48_vm0, %v184_v6, 0.0  ;;  %v70_v14 = vadd.f32 %v69_v11, %v68_v10  ;;  %v73_v17 = vsel %vm48_vm0, %v185_v7, 0.0  ;;  %202 = vmatprep.subr.bf16.mxu0 %v287_v0  ;;  %v75_v20 = vsel %vm48_vm0, %v188_v9, 0.0  ;;  %p258_p10 = scmp.ne.s32.totalorder %s165_s25, %s257_s26  ;;  %p263_p12 = scmp.lt.s32.totalorder %s257_s26, %s257_s26 }
  0x21   :  { %v77_v23 = vsel %vm48_vm0, %v189_v16, 0.0  ;;  %v79_v25 = vsel %vm48_vm0, %v192_v19, 0.0  ;;  %v81_v27 = vsel %vm48_vm0, %v193_v22, 0.0 }
  0x22   :  { %v72_v18 = vadd.f32 %v71_v12, %v70_v14  ;;  %p264_p13 = por %p263_p12, %p262_p11 }
  0x23   :  { %203 = vmatpush3.bf16.msra.mxu0 %v216_v15 }
  0x24   :  { %v74_v21 = vadd.f32 %v73_v17, %v72_v18  ;;  %v66_v29 = vld [vmem:[#allocation2] sm:$0xff]  ;;  %p265_p0 = pnand %p264_p13, %p258_p10 }
  0x26   :  { %v76_v24 = vadd.f32 %v75_v20, %v74_v21 }
  0x28   :  { %v78_v26 = vadd.f32 %v77_v23, %v76_v24 }
  0x2a   :  { %v80_v28 = vadd.f32 %v79_v25, %v78_v26 }
  0x2c   :  { %v82_v30 = vadd.f32 %v81_v27, %v80_v28 }
  0x2e   :  { %v83_v31 = vadd.f32 %v82_v30, %v66_v29 }
  0x30   :  { %84 = vst.msk [vmem:[#allocation2] sm:$0xff] %vm48_vm0, %v83_v31 }
  0x37   :  { %v88_v32 = vld [vmem:[#allocation2] sm:$0xff] }
  0x38   :  { %v89_v33 = vmul.f32 0.125, %v88_v32 }
  0x3a   :  { %v90_v34 = vpack.c.bf16 %v89_v33, %v89_v33 }
  0x3c   :  { %205 = vmatmul.mubr.msk.bf16.vlgmr.msra.gmra.mxu0 %vm48_vm0, %v90_v34 }
  0xfc   :  { %v151_v36 = vpop.f32.mrf.mxu0 }
  0xfd   :  { %v152_v37 = vadd.f32 %v174_v35, %v151_v36 }
  0xfe   :  { %v206_v38 = vpop.f32.mrf.mxu0 }
  0xff   :  { %157 = vst [vmem:[#allocation8] sm:$0xff] %v152_v37 }
 0x100   :  { %v154_v39 = vpop.f32.mrf.mxu0 }
 0x101   :  { %268 = shalt.err (!%p265_p0)
}
 0x102   :  { %167 = dma.vmem_to_hbm [thread:$0]  %s165_s25, 128, %s336_s3, [#allocation5]   ;;  %v207_v40 = vpop.f32.mrf.mxu0 }
 0x103   :  { %281 = dma.done.wait [#allocation5], 128  }
 0x104   :  { %282 = vsyncadd [#allocation5], 4294967168 }
 0x105   :  { %171 = vsyncpa [#allocation4], 1 }
 0x106   :  { %172 = vsyncpa [#allocation7], 1 }
 0x107   :  { %173 = vsyncpa [#allocation5], 1 }

</bundles_post_ra>
